<compile_context>
chip_gen: v7x
topology: tpu7x:2x2x1
jax: 0.10.0
libtpu: 0.0.40
codegen_flags: <defaults>
</compile_context>

<pallas_src>
import functools

import numpy as np

import jax
import jax.numpy as jnp
from jax import lax
from jax.experimental import pallas as pl
from jax.experimental.pallas import tpu as pltpu


def _round_up(x, m):
    return (x + m - 1) // m * m


def _choose_batch_tile(B, per_b_bytes, fixed_bytes, budget_bytes):
    """Pick a batch tile: VMEM-bounded, multiple of 8 (or == B), >=2 steps
    when the batch allows, preferring exact divisors of B (no wrapper pad)."""
    if B <= 8:
        return B                                  # one step, block = full batch
    avail = max(budget_bytes - fixed_bytes, 8 * per_b_bytes)
    bt_vmem = max(8, (avail // per_b_bytes) // 8 * 8)
    target_steps = 4 if B >= 32 else 2            # megacore + DMA pipelining
    upper = max(8, min(bt_vmem, _round_up(-(-B // target_steps), 8)))
    # 1) largest multiple-of-8 tile that divides B exactly (no batch pad)
    for bt in range(upper, 7, -8):
        if B % bt == 0:
            return bt
    # 2) otherwise, smallest wrapper-side padding (ties -> larger tile)
    return min(range(8, upper + 1, 8),
               key=lambda bt: (_round_up(B, bt) - B, -bt))


def _make_kernel(bt, T0, TR, TS, E, C_pad, max_h, x_dtype):
    """Fused conv + relu + global-maxpool + fc for one (bt, T0, E) batch slab.

    T0: original text length; TR: conv rows computed (multiple of 8);
    TS: halo'd x-scratch rows (TR + max_h - 1, rounded up to 8).
    """

    def kernel(x_ref, wstack_ref, ball_ref, limit_ref, fcw_ref, fcb_ref,
               o_ref, xpad_ref, conv_ref):
        # ---- stage 0: copy x block into the halo'd scratch -----------------
        # The halo lets every shift-k matmul read a full TR-row, 8-aligned
        # window.  The tail MUST be zeroed: stale VMEM could be NaN and
        # 0-weight * NaN = NaN would leak into valid rows otherwise.  Zeroed
        # rows only ever feed masked-out conv rows, so semantics are exact.
        xpad_ref[:, 0:T0, :] = x_ref[...]
        if TS > T0:
            xpad_ref[:, T0:TS, :] = jnp.zeros((bt, TS - T0, E), x_dtype)

        # ---- stage 1: conv as max_h shift-matmuls ---------------------------
        #   conv[:, t, :] = sum_k x[:, t+k, :] @ W_stack[k]
        # Each tap is one lane-dense MXU matmul; the shift is a VMEM load at a
        # small sublane offset, never a relayout of a live value.
        conv = None
        for k in range(max_h):
            xk = xpad_ref[:, k:k + TR, :].reshape(bt * TR, E)   # TR % 8 == 0
            part = jnp.dot(xk, wstack_ref[k],
                           preferred_element_type=jnp.float32)
            part = part.reshape(bt, TR, C_pad)
            if max_h == 1:
                conv = part
            elif k == 0:
                conv_ref[...] = part
            elif k < max_h - 1:
                conv_ref[...] += part
            else:
                conv = conv_ref[...] + part      # fuse last tap with pooling

        # ---- stage 2: masked global max over time, then bias + ReLU --------
        # Lane c belongs to window w(c) and is valid for t < l_out_{w(c)}
        # (limit = 0 on padding lanes -> -inf -> relu -> 0).  relu(x + b) is
        # monotone in x, so bias + ReLU commute with the max and run on the
        # pooled (bt, C_pad) tile only.
        t_idx = lax.broadcasted_iota(jnp.int32, (TR, C_pad), 0)
        valid = (t_idx < limit_ref[...])[None]                  # (1, TR, C_pad)
        pooled = jnp.max(jnp.where(valid, conv, -jnp.inf), axis=1)
        pooled = jnp.maximum(pooled + ball_ref[...], 0.0)       # (bt, C_pad)

        # ---- stage 3: single fused FC matmul, lane-dense store --------------
        logits = jnp.dot(pooled, fcw_ref[...],
                         preferred_element_type=jnp.float32) + fcb_ref[...]
        o_ref[...] = logits.astype(o_ref.dtype)

    return kernel


@functools.partial(jax.jit,
                   static_argnames=("window_sizes", "mxu_dtype",
                                    "vmem_budget_bytes"))
def cnn_forward(x, conv_ws, conv_bs, fc_w, fc_b, *, window_sizes,
                mxu_dtype=jnp.bfloat16,
                vmem_budget_bytes=20 * 1024 * 1024):
    """x: (B, T, E) -> logits (B, num_class) float32 (eval-mode forward)."""
    B, T, E = x.shape
    F = conv_ws[0].shape[-1]
    n_w = len(window_sizes)
    num_class = fc_w.shape[-1]
    max_h = max(window_sizes)
    min_h = min(window_sizes)
    assert max_h <= T, "window size exceeds text length"

    xbytes = np.dtype(mxu_dtype).itemsize
    C = n_w * F
    C_pad = _round_up(C, 128)            # conv channels, lane-padded
    nc_pad = _round_up(num_class, 128)   # lane-dense output slab
    TR = _round_up(T - min_h + 1, 8)     # conv rows (8-aligned reshapes)
    TS = _round_up(TR + max_h - 1, 8)    # halo'd x scratch rows

    # --- conv weights: W_stack[k, :, wi*F:(wi+1)*F] = k-th tap of window wi --
    w_stack = jnp.zeros((max_h, E, C_pad), jnp.float32)
    for wi, (h, w) in enumerate(zip(window_sizes, conv_ws)):
        w_stack = w_stack.at[:h, :, wi * F:(wi + 1) * F].set(w)
    w_stack = w_stack.astype(mxu_dtype)

    b_all = jnp.zeros((1, C_pad), jnp.float32)
    b_all = b_all.at[:, :C].set(jnp.concatenate(conv_bs, axis=1))

    # per-lane valid-time limit (static -> baked as a constant)
    lim = np.zeros((1, C_pad), np.int32)
    for wi, h in enumerate(window_sizes):
        lim[0, wi * F:(wi + 1) * F] = T - h + 1
    limit = jnp.asarray(lim)

    # --- FC padded so the whole FC is one lane-aligned matmul ---------------
    fcw_p = jnp.zeros((C_pad, nc_pad), jnp.float32)
    fcw_p = fcw_p.at[:C, :num_class].set(fc_w)
    fcb_p = jnp.zeros((1, nc_pad), jnp.float32)
    fcb_p = fcb_p.at[:, :num_class].set(fc_b)

    # --- wrapper-side cast: halves the x DMA and kills the in-kernel cast ---
    # (with an upstream producer, e.g. an embedding lookup, XLA fuses this)
    x = x.astype(mxu_dtype)

    # --- VMEM-budgeted batch tile --------------------------------------------
    fixed_bytes = 2 * (max_h * E * C_pad * xbytes          # W_stack
                       + 2 * C_pad * 4                     # b_all + limit
                       + C_pad * nc_pad * 4 + nc_pad * 4)  # fc weights/bias
    per_b_bytes = (2 * T * E * xbytes     # double-buffered x block
                   + TS * E * xbytes      # halo'd x scratch
                   + TR * C_pad * 4       # f32 conv accumulator scratch
                   + TR * C_pad * 4       # headroom for un-fused matmul result
                   + 2 * nc_pad * 4)      # double-buffered output block
    bt = _choose_batch_tile(B, per_b_bytes, fixed_bytes, vmem_budget_bytes)
    b_pad = _round_up(B, bt)
    if b_pad != B:
        # Fallback only; _choose_batch_tile prefers exact divisors of B.
        # Padded rows produce harmless finite garbage and are sliced off.
        x = jnp.pad(x, ((0, b_pad - B), (0, 0), (0, 0)))

    vmem_limit = int(min(max(32 << 20,
                             fixed_bytes + bt * per_b_bytes + (4 << 20)),
                         100 << 20))
    # TODO(synk): configs with T*E far beyond the module defaults would need an
    # additional time-axis tiling rather than only a larger vmem limit.

    kernel = _make_kernel(bt, T, TR, TS, E, C_pad, max_h, mxu_dtype)

    out = pl.pallas_call(
        kernel,
        out_shape=jax.ShapeDtypeStruct((b_pad, nc_pad), jnp.float32),
        grid_spec=pltpu.PrefetchScalarGridSpec(
            num_scalar_prefetch=0,
            grid=(b_pad // bt,),
            in_specs=[
                # x: the only HBM-heavy stream.  (If DMA is still exposed on
                # v6e, pipeline_mode=pl.Buffered(3) here is the next lever.)
                pl.BlockSpec((bt, T, E), lambda b: (b, 0, 0)),
                # resident weights / constants (tiny, constant block index)
                pl.BlockSpec((max_h, E, C_pad), lambda b: (0, 0, 0)),
                pl.BlockSpec((1, C_pad), lambda b: (0, 0)),
                pl.BlockSpec((1, C_pad), lambda b: (0, 0)),
                pl.BlockSpec((C_pad, nc_pad), lambda b: (0, 0)),
                pl.BlockSpec((1, nc_pad), lambda b: (0, 0)),
            ],
            out_specs=pl.BlockSpec((bt, nc_pad), lambda b: (b, 0)),
            scratch_shapes=[
                pltpu.VMEM((bt, TS, E), mxu_dtype),       # halo'd x copy
                pltpu.VMEM((bt, TR, C_pad), jnp.float32),  # conv accumulator
            ],
        ),
        compiler_params=pltpu.CompilerParams(
            dimension_semantics=("parallel",),
            vmem_limit_bytes=vmem_limit),
    )(x, w_stack, b_all, limit, fcw_p, fcb_p)

    return out[:B, :num_class]


def init_params(key, embedding_size, feature_size, window_sizes, num_class):
    """Deterministic synthetic parameters (same shapes as the nn.Module)."""
    n_w = len(window_sizes)
    keys = jax.random.split(key, 2 * n_w + 2)
    conv_ws, conv_bs = [], []
    for i, h in enumerate(window_sizes):
        # PyTorch Conv1d weight is (F, E, h); stored here as (h, E, F).
        w = jax.random.normal(keys[2 * i], (h, embedding_size, feature_size),
                              dtype=jnp.float32) * 0.1
        b = jax.random.normal(keys[2 * i + 1], (1, feature_size),
                              dtype=jnp.float32) * 0.1
        conv_ws.append(w)
        conv_bs.append(b)
    # PyTorch Linear weight is (num_class, n_w*F); stored transposed.
    fc_w = jax.random.normal(keys[-2], (n_w * feature_size, num_class),
                             dtype=jnp.float32) * 0.1
    fc_b = jax.random.normal(keys[-1], (1, num_class), dtype=jnp.float32) * 0.1
    return conv_ws, conv_bs, fc_w, fc_b


def reference_forward(x, conv_ws, conv_bs, fc_w, fc_b, window_sizes):
    """Pure-JAX reference mirroring the PyTorch forward (eval mode)."""
    feats = []
    for h, w, bias in zip(window_sizes, conv_ws, conv_bs):
        T = x.shape[1]
        l_out = T - h + 1
        acc = jnp.zeros((x.shape[0], l_out, w.shape[-1]), jnp.float32)
        for k in range(h):
            acc = acc + jnp.einsum("bte,ef->btf", x[:, k:k + l_out, :], w[k])
        acc = jnp.maximum(acc + bias[None, :, :], 0.0)
        feats.append(jnp.max(acc, axis=1))                    # (B, F)
    feat = jnp.concatenate(feats, axis=1)
    return feat @ fc_w + fc_b


if __name__ == "__main__":
    # Small shapes consistent with the module's forward:
    #   batch=2, max_text_len=16, embedding_size=32,
    #   feature_size=4, window_sizes=(2,3,4), num_class=2.
    B, T, E = 2, 16, 32
    F, num_class = 4, 2
    window_sizes = (2, 3, 4)

    key = jax.random.PRNGKey(0)
    k_x, k_p = jax.random.split(key)
    x = jax.random.normal(k_x, (B, T, E), dtype=jnp.float32)
    conv_ws, conv_bs, fc_w, fc_b = init_params(k_p, E, F, window_sizes,
                                               num_class)

    ref = reference_forward(x, conv_ws, conv_bs, fc_w, fc_b, window_sizes)

    # f32 MXU path: tight-tolerance check against the pure-JAX reference.
    out_f32 = cnn_forward(x, conv_ws, conv_bs, fc_w, fc_b,
                          window_sizes=window_sizes,
                          mxu_dtype=jnp.float32)
    out_f32 = jax.block_until_ready(out_f32)
    assert out_f32.shape == (B, num_class)
    assert jnp.allclose(out_f32, ref, atol=1e-4, rtol=1e-4), (out_f32, ref)

    # bf16 MXU path (default; halves the x DMA): loose-tolerance check.
    out_bf16 = cnn_forward(x, conv_ws, conv_bs, fc_w, fc_b,
                           window_sizes=window_sizes,
                           mxu_dtype=jnp.bfloat16)
    out_bf16 = jax.block_until_ready(out_bf16)
    assert out_bf16.shape == (B, num_class)
    assert jnp.allclose(out_bf16, ref, atol=3e-2, rtol=3e-2), (out_bf16, ref)

    print("KERNEL_OK")
</pallas_src>

<mosaic_0001>
module attributes {stable_mosaic.version = 11 : i64} {
  func.func @kernel(%arg0: i32, %arg1: memref<2x16x32xf32, #tpu.memory_space<vmem>>, %arg2: memref<4x32x128xf32, #tpu.memory_space<vmem>>, %arg3: memref<1x128xf32, #tpu.memory_space<vmem>>, %arg4: memref<1x128xi32, #tpu.memory_space<vmem>>, %arg5: memref<128x128xf32, #tpu.memory_space<vmem>>, %arg6: memref<1x128xf32, #tpu.memory_space<vmem>>, %arg7: memref<2x128xf32, #tpu.memory_space<vmem>>, %arg8: memref<2x24x32xf32, #tpu.memory_space<vmem>>, %arg9: memref<2x16x128xf32, #tpu.memory_space<vmem>>) attributes {dimension_semantics = [#tpu.dimension_semantics<parallel>], iteration_bounds = array<i64: 1>, scalar_prefetch = 0 : i64, scratch_operands = 2 : i64, tpu.core_type = #tpu.core_type<tc>, window_params = [{transform_indices = @transform_0, window_bounds = array<i64: 2, 16, 32>}, {pipeline_mode = #tpu.pipeline_mode<synchronous>, transform_indices = @transform_1, window_bounds = array<i64: 4, 32, 128>}, {pipeline_mode = #tpu.pipeline_mode<synchronous>, transform_indices = @transform_2, window_bounds = array<i64: 1, 128>}, {pipeline_mode = #tpu.pipeline_mode<synchronous>, transform_indices = @transform_3, window_bounds = array<i64: 1, 128>}, {pipeline_mode = #tpu.pipeline_mode<synchronous>, transform_indices = @transform_4, window_bounds = array<i64: 128, 128>}, {pipeline_mode = #tpu.pipeline_mode<synchronous>, transform_indices = @transform_5, window_bounds = array<i64: 1, 128>}, {transform_indices = @transform_6, window_bounds = array<i64: 2, 128>}]} {
    %c0 = arith.constant 0 : index
    %c0_0 = arith.constant 0 : index
    %c0_1 = arith.constant 0 : index
    %0 = vector.load %arg1[%c0, %c0_0, %c0_1] : memref<2x16x32xf32, #tpu.memory_space<vmem>>, vector<2x16x32xf32>
    %c0_2 = arith.constant 0 : index
    %c0_3 = arith.constant 0 : index
    %c0_4 = arith.constant 0 : index
    %1 = vector.load %arg8[%c0_2, %c0_3, %c0_4] : memref<2x24x32xf32, #tpu.memory_space<vmem>>, vector<2x16x32xf32>
    tpu.vector_store %arg8[%c0_2, %c0_3, %c0_4], %0 {strides = array<i32>} : memref<2x24x32xf32, #tpu.memory_space<vmem>>, vector<2x16x32xf32>,
    %cst = arith.constant 0.000000e+00 : f32
    %2 = vector.broadcast %cst : f32 to vector<2x8x32xf32>
    %c0_5 = arith.constant 0 : index
    %c16 = arith.constant 16 : index
    %c0_6 = arith.constant 0 : index
    %3 = vector.load %arg8[%c0_5, %c16, %c0_6] : memref<2x24x32xf32, #tpu.memory_space<vmem>>, vector<2x8x32xf32>
    tpu.vector_store %arg8[%c0_5, %c16, %c0_6], %2 {strides = array<i32>} : memref<2x24x32xf32, #tpu.memory_space<vmem>>, vector<2x8x32xf32>,
    %c0_7 = arith.constant 0 : index
    %c0_8 = arith.constant 0 : index
    %c0_9 = arith.constant 0 : index
    %4 = vector.load %arg8[%c0_7, %c0_8, %c0_9] : memref<2x24x32xf32, #tpu.memory_space<vmem>>, vector<2x16x32xf32>
    %5 = vector.shape_cast %4 : vector<2x16x32xf32> to vector<32x32xf32>
    %c0_10 = arith.constant 0 : index
    %c0_11 = arith.constant 0 : index
    %c0_12 = arith.constant 0 : index
    %6 = vector.load %arg2[%c0_10, %c0_11, %c0_12] : memref<4x32x128xf32, #tpu.memory_space<vmem>>, vector<1x32x128xf32>
    %7 = vector.shape_cast %6 : vector<1x32x128xf32> to vector<32x128xf32>
    %cst_13 = arith.constant dense<0.000000e+00> : vector<32x128xf32>
    %8 = tpu.matmul %5, %7, %cst_13 {dimension_numbers = #tpu.dot_dimension_numbers<[1], [0], [0], [1], [0, 0, 1, 1], [], []>} : vector<32x32xf32>, vector<32x128xf32>, vector<32x128xf32> -> vector<32x128xf32>
    %9 = vector.shape_cast %8 : vector<32x128xf32> to vector<2x16x128xf32>
    %c0_14 = arith.constant 0 : index
    %c0_15 = arith.constant 0 : index
    %c0_16 = arith.constant 0 : index
    %10 = vector.load %arg9[%c0_14, %c0_15, %c0_16] : memref<2x16x128xf32, #tpu.memory_space<vmem>>, vector<2x16x128xf32>
    tpu.vector_store %arg9[%c0_14, %c0_15, %c0_16], %9 {strides = array<i32>} : memref<2x16x128xf32, #tpu.memory_space<vmem>>, vector<2x16x128xf32>,
    %c0_17 = arith.constant 0 : index
    %c1 = arith.constant 1 : index
    %c0_18 = arith.constant 0 : index
    %11 = vector.load %arg8[%c0_17, %c1, %c0_18] : memref<2x24x32xf32, #tpu.memory_space<vmem>>, vector<2x16x32xf32>
    %12 = vector.shape_cast %11 : vector<2x16x32xf32> to vector<32x32xf32>
    %c1_19 = arith.constant 1 : index
    %c0_20 = arith.constant 0 : index
    %c0_21 = arith.constant 0 : index
    %13 = vector.load %arg2[%c1_19, %c0_20, %c0_21] : memref<4x32x128xf32, #tpu.memory_space<vmem>>, vector<1x32x128xf32>
    %14 = vector.shape_cast %13 : vector<1x32x128xf32> to vector<32x128xf32>
    %cst_22 = arith.constant dense<0.000000e+00> : vector<32x128xf32>
    %15 = tpu.matmul %12, %14, %cst_22 {dimension_numbers = #tpu.dot_dimension_numbers<[1], [0], [0], [1], [0, 0, 1, 1], [], []>} : vector<32x32xf32>, vector<32x128xf32>, vector<32x128xf32> -> vector<32x128xf32>
    %16 = vector.shape_cast %15 : vector<32x128xf32> to vector<2x16x128xf32>
    %c0_23 = arith.constant 0 : index
    %c0_24 = arith.constant 0 : index
    %c0_25 = arith.constant 0 : index
    %17 = vector.load %arg9[%c0_23, %c0_24, %c0_25] : memref<2x16x128xf32, #tpu.memory_space<vmem>>, vector<2x16x128xf32>
    %18 = arith.addf %17, %16 : vector<2x16x128xf32>
    %c0_26 = arith.constant 0 : index
    %c0_27 = arith.constant 0 : index
    %c0_28 = arith.constant 0 : index
    %19 = vector.load %arg9[%c0_26, %c0_27, %c0_28] : memref<2x16x128xf32, #tpu.memory_space<vmem>>, vector<2x16x128xf32>
    tpu.vector_store %arg9[%c0_26, %c0_27, %c0_28], %18 {strides = array<i32>} : memref<2x16x128xf32, #tpu.memory_space<vmem>>, vector<2x16x128xf32>,
    %c0_29 = arith.constant 0 : index
    %c2 = arith.constant 2 : index
    %c0_30 = arith.constant 0 : index
    %20 = vector.load %arg8[%c0_29, %c2, %c0_30] : memref<2x24x32xf32, #tpu.memory_space<vmem>>, vector<2x16x32xf32>
    %21 = vector.shape_cast %20 : vector<2x16x32xf32> to vector<32x32xf32>
    %c2_31 = arith.constant 2 : index
    %c0_32 = arith.constant 0 : index
    %c0_33 = arith.constant 0 : index
    %22 = vector.load %arg2[%c2_31, %c0_32, %c0_33] : memref<4x32x128xf32, #tpu.memory_space<vmem>>, vector<1x32x128xf32>
    %23 = vector.shape_cast %22 : vector<1x32x128xf32> to vector<32x128xf32>
    %cst_34 = arith.constant dense<0.000000e+00> : vector<32x128xf32>
    %24 = tpu.matmul %21, %23, %cst_34 {dimension_numbers = #tpu.dot_dimension_numbers<[1], [0], [0], [1], [0, 0, 1, 1], [], []>} : vector<32x32xf32>, vector<32x128xf32>, vector<32x128xf32> -> vector<32x128xf32>
    %25 = vector.shape_cast %24 : vector<32x128xf32> to vector<2x16x128xf32>
    %c0_35 = arith.constant 0 : index
    %c0_36 = arith.constant 0 : index
    %c0_37 = arith.constant 0 : index
    %26 = vector.load %arg9[%c0_35, %c0_36, %c0_37] : memref<2x16x128xf32, #tpu.memory_space<vmem>>, vector<2x16x128xf32>
    %27 = arith.addf %26, %25 : vector<2x16x128xf32>
    %c0_38 = arith.constant 0 : index
    %c0_39 = arith.constant 0 : index
    %c0_40 = arith.constant 0 : index
    %28 = vector.load %arg9[%c0_38, %c0_39, %c0_40] : memref<2x16x128xf32, #tpu.memory_space<vmem>>, vector<2x16x128xf32>
    tpu.vector_store %arg9[%c0_38, %c0_39, %c0_40], %27 {strides = array<i32>} : memref<2x16x128xf32, #tpu.memory_space<vmem>>, vector<2x16x128xf32>,
    %c0_41 = arith.constant 0 : index
    %c3 = arith.constant 3 : index
    %c0_42 = arith.constant 0 : index
    %29 = vector.load %arg8[%c0_41, %c3, %c0_42] : memref<2x24x32xf32, #tpu.memory_space<vmem>>, vector<2x16x32xf32>
    %30 = vector.shape_cast %29 : vector<2x16x32xf32> to vector<32x32xf32>
    %c3_43 = arith.constant 3 : index
    %c0_44 = arith.constant 0 : index
    %c0_45 = arith.constant 0 : index
    %31 = vector.load %arg2[%c3_43, %c0_44, %c0_45] : memref<4x32x128xf32, #tpu.memory_space<vmem>>, vector<1x32x128xf32>
    %32 = vector.shape_cast %31 : vector<1x32x128xf32> to vector<32x128xf32>
    %cst_46 = arith.constant dense<0.000000e+00> : vector<32x128xf32>
    %33 = tpu.matmul %30, %32, %cst_46 {dimension_numbers = #tpu.dot_dimension_numbers<[1], [0], [0], [1], [0, 0, 1, 1], [], []>} : vector<32x32xf32>, vector<32x128xf32>, vector<32x128xf32> -> vector<32x128xf32>
    %34 = vector.shape_cast %33 : vector<32x128xf32> to vector<2x16x128xf32>
    %c0_47 = arith.constant 0 : index
    %c0_48 = arith.constant 0 : index
    %c0_49 = arith.constant 0 : index
    %35 = vector.load %arg9[%c0_47, %c0_48, %c0_49] : memref<2x16x128xf32, #tpu.memory_space<vmem>>, vector<2x16x128xf32>
    %36 = arith.addf %35, %34 : vector<2x16x128xf32>
    %37 = tpu.iota {dimensions = array<i32: 0>} : vector<16x128xi32>
    %c0_50 = arith.constant 0 : index
    %c0_51 = arith.constant 0 : index
    %38 = vector.load %arg4[%c0_50, %c0_51] : memref<1x128xi32, #tpu.memory_space<vmem>>, vector<1x128xi32>
    %39 = vector.broadcast %38 : vector<1x128xi32> to vector<16x128xi32>
    %40 = arith.cmpi slt, %37, %39 : vector<16x128xi32>
    %41 = vector.shape_cast %40 : vector<16x128xi1> to vector<1x16x128xi1>
    %cst_52 = arith.constant 0xFF800000 : f32
    %42 = vector.shape_cast %41 : vector<1x16x128xi1> to vector<1x16x128xi1>
    %43 = vector.broadcast %42 : vector<1x16x128xi1> to vector<2x16x128xi1>
    %44 = vector.broadcast %cst_52 : f32 to vector<2x16x128xf32>
    %45 = arith.select %43, %36, %44 : vector<2x16x128xi1>, vector<2x16x128xf32>
    %cst_53 = arith.constant dense<0xFF800000> : vector<2x128xf32>
    %46 = vector.multi_reduction <maximumf>, %45, %cst_53 [1] : vector<2x16x128xf32> to vector<2x128xf32>
    %c0_54 = arith.constant 0 : index
    %c0_55 = arith.constant 0 : index
    %47 = vector.load %arg3[%c0_54, %c0_55] : memref<1x128xf32, #tpu.memory_space<vmem>>, vector<1x128xf32>
    %48 = vector.broadcast %47 : vector<1x128xf32> to vector<2x128xf32>
    %49 = arith.addf %46, %48 : vector<2x128xf32>
    %cst_56 = arith.constant 0.000000e+00 : f32
    %50 = vector.broadcast %cst_56 : f32 to vector<2x128xf32>
    %51 = arith.maximumf %49, %50 : vector<2x128xf32>
    %c0_57 = arith.constant 0 : index
    %c0_58 = arith.constant 0 : index
    %52 = vector.load %arg5[%c0_57, %c0_58] : memref<128x128xf32, #tpu.memory_space<vmem>>, vector<128x128xf32>
    %cst_59 = arith.constant dense<0.000000e+00> : vector<2x128xf32>
    %53 = tpu.matmul %51, %52, %cst_59 {dimension_numbers = #tpu.dot_dimension_numbers<[1], [0], [0], [1], [0, 0, 1, 1], [], []>} : vector<2x128xf32>, vector<128x128xf32>, vector<2x128xf32> -> vector<2x128xf32>
    %c0_60 = arith.constant 0 : index
    %c0_61 = arith.constant 0 : index
    %54 = vector.load %arg6[%c0_60, %c0_61] : memref<1x128xf32, #tpu.memory_space<vmem>>, vector<1x128xf32>
    %55 = vector.broadcast %54 : vector<1x128xf32> to vector<2x128xf32>
    %56 = arith.addf %53, %55 : vector<2x128xf32>
    %c0_62 = arith.constant 0 : index
    %c0_63 = arith.constant 0 : index
    %57 = vector.load %arg7[%c0_62, %c0_63] : memref<2x128xf32, #tpu.memory_space<vmem>>, vector<2x128xf32>
    tpu.vector_store %arg7[%c0_62, %c0_63], %56 {strides = array<i32>} : memref<2x128xf32, #tpu.memory_space<vmem>>, vector<2x128xf32>,
    return
  }
  func.func @transform_0(%arg0: i32) -> (i32, i32, i32) {
    %c0_i32 = arith.constant 0 : i32
    %c0_i32_0 = arith.constant 0 : i32
    %c0_i32_1 = arith.constant 0 : i32
    return %arg0, %c0_i32, %c0_i32_0 : i32, i32, i32
  }
  func.func @transform_1(%arg0: i32) -> (i32, i32, i32) {
    %c0_i32 = arith.constant 0 : i32
    %c0_i32_0 = arith.constant 0 : i32
    %c0_i32_1 = arith.constant 0 : i32
    %c0_i32_2 = arith.constant 0 : i32
    return %c0_i32, %c0_i32_0, %c0_i32_1 : i32, i32, i32
  }
  func.func @transform_2(%arg0: i32) -> (i32, i32) {
    %c0_i32 = arith.constant 0 : i32
    %c0_i32_0 = arith.constant 0 : i32
    %c0_i32_1 = arith.constant 0 : i32
    return %c0_i32, %c0_i32_0 : i32, i32
  }
  func.func @transform_3(%arg0: i32) -> (i32, i32) {
    %c0_i32 = arith.constant 0 : i32
    %c0_i32_0 = arith.constant 0 : i32
    %c0_i32_1 = arith.constant 0 : i32
    return %c0_i32, %c0_i32_0 : i32, i32
  }
  func.func @transform_4(%arg0: i32) -> (i32, i32) {
    %c0_i32 = arith.constant 0 : i32
    %c0_i32_0 = arith.constant 0 : i32
    %c0_i32_1 = arith.constant 0 : i32
    return %c0_i32, %c0_i32_0 : i32, i32
  }
  func.func @transform_5(%arg0: i32) -> (i32, i32) {
    %c0_i32 = arith.constant 0 : i32
    %c0_i32_0 = arith.constant 0 : i32
    %c0_i32_1 = arith.constant 0 : i32
    return %c0_i32, %c0_i32_0 : i32, i32
  }
  func.func @transform_6(%arg0: i32) -> (i32, i32) {
    %c0_i32 = arith.constant 0 : i32
    %c0_i32_0 = arith.constant 0 : i32
    return %arg0, %c0_i32 : i32, i32
  }
}

</mosaic_0001>

<bundles_post_ra>
// kernel: cnn_forward.1
= control target key start
LH: loop header
LB: loop body
LE: loop exit
PB: predicated region body
PF: predicated region fallthrough
CT: control target
= control target key end

     0   :  { %vm28_vm0 = vcmask 261120   ;;  %v918_v7 = vmov 0.0   ;;  %v919_v8 = vmov 0.0|0.0   ;;  %s1119_s0 = inlined_call_operand.vmem [shape: f32[2,16,32], index: 0, kind: input, shape index: {}]   ;;  %s1120_s1 = inlined_call_operand.vmem [shape: f32[4,32,128], index: 1, kind: input, shape index: {}]   ;;  %s1121_s2 = inlined_call_operand.vmem [shape: f32[1,128], index: 2, kind: input, shape index: {}]   ;;  %s1122_s3 = inlined_call_operand.vmem [shape: s32[1,128], index: 3, kind: input, shape index: {}]   ;;  %s1123_s4 = inlined_call_operand.vmem [shape: f32[128,128], index: 4, kind: input, shape index: {}]   ;;  %s1124_s5 = inlined_call_operand.vmem [shape: f32[1,128], index: 5, kind: input, shape index: {}]   ;;  %s1125_s6 = inlined_call_operand.hbm [shape: f32[2,128], index: 6, kind: output, shape index: {}]  }
   0x1   :  { %v39_v0 = vld [vmem:[%s1120_s1] sm:$0xff]  ;;  %v40_v1 = vld [vmem:[%s1120_s1 + $0x8] sm:$0xff]  ;;  %v41_v2 = vld [vmem:[%s1120_s1 + $0x10] sm:$0xff]  ;;  %33 = vst.msk [vmem:[#allocation2 + $0x10] sm:$0xff] %vm28_vm0, %v918_v7  ;;  %854 = vmatprep.subr.bf16.mxu1 %v919_v8 }
   0x2   :  { %v822_v3 = vpack.c.bf16 %v40_v1, %v39_v0  ;;  %v42_v4 = vld [vmem:[%s1120_s1 + $0x18] sm:$0xff]  ;;  %v24_v5 = vld [vmem:[%s1119_s0] sm:$0xff]  ;;  %v25_v6 = vld [vmem:[%s1119_s0 + $0x8] sm:$0xff]  ;;  %34 = vst.msk [vmem:[#allocation2 + $0x28] sm:$0xff] %vm28_vm0, %v918_v7 }
   0x3   :  { %v826_v9 = vpack.c.bf16 %v42_v4, %v41_v2  ;;  %29 = vst.msk [vmem:[#allocation2] sm:$0xff] %vm28_vm0, %v24_v5  ;;  %30 = vst.msk [vmem:[#allocation2 + $0x8] sm:$0xff] %vm28_vm0, %v25_v6  ;;  %v655_v10 = vld [vmem:[%s1120_s1 + $0x20] sm:$0xff]  ;;  %v656_v11 = vld [vmem:[%s1120_s1 + $0x28] sm:$0xff] }
   0x4   :  { %v26_v12 = vld [vmem:[%s1119_s0 + $0x10] sm:$0xff]  ;;  %823 = vmatprep.subr.bf16.mxu0 %v822_v3  ;;  %v27_v13 = vld [vmem:[%s1119_s0 + $0x18] sm:$0xff]  ;;  %v830_v14 = vpack.c.bf16 %v656_v11, %v655_v10  ;;  %v537_v17 = vld [vmem:[%s1123_s4] sm:$0xff] }
   0x5   :  { %31 = vst.msk [vmem:[#allocation2 + $0x18] sm:$0xff] %vm28_vm0, %v26_v12  ;;  %825 = vmatpush3.bf16.msra.mxu0 %v822_v3  ;;  %32 = vst.msk [vmem:[#allocation2 + $0x20] sm:$0xff] %vm28_vm0, %v27_v13  ;;  %v657_v15 = vld [vmem:[%s1120_s1 + $0x30] sm:$0xff]  ;;  %v658_v16 = vld [vmem:[%s1120_s1 + $0x38] sm:$0xff] }
   0x6   :  { %827 = vmatprep.subr.bf16.mxu0 %v826_v9  ;;  %v538_v18 = vld [vmem:[%s1123_s4 + $0x8] sm:$0xff] }
   0x7   :  { %11 = vsyncpa [#allocation5], 0  ;;  %v855_v19 = vpack.c.bf16 %v538_v18, %v537_v17  ;;  %v834_v22 = vpack.c.bf16 %v658_v16, %v657_v15  ;;  %v663_v24 = vld [vmem:[%s1120_s1 + $0x40] sm:$0xff]  ;;  %v664_v25 = vld [vmem:[%s1120_s1 + $0x48] sm:$0xff]  ;;  %vm920_vm1 = vmmov 0   ;;  %v494_v6 = vlaneseq  ;;  %s921_s21 = smov [#allocation4]  }
   0x8   :  { %v838_v28 = vpack.c.bf16 %v664_v25, %v663_v24  ;;  %v665_v29 = vld [vmem:[%s1120_s1 + $0x50] sm:$0xff]  ;;  %v666_v30 = vld [vmem:[%s1120_s1 + $0x58] sm:$0xff]  ;;  %v671_v34 = vld [vmem:[%s1120_s1 + $0x60] sm:$0xff]  ;;  %819 = vmatprep.mubr.msk.f32.mxu1 %vm920_vm1, %v918_v7  ;;  %vm563_vm4 = vcmask 1041409   ;;  %s643_s22 = sshll.u32 %s921_s21, 4  ;;  %s644_s22 = int_to_ptr.vmem [resolvable:$true] %s643_s22 }
   0x9   :  { %829 = vmatpush3.bf16.msra.mxu0 %v826_v9  ;;  %856 = vmatpush3.bf16.msra.mxu1 %v855_v19  ;;  %v842_v33 = vpack.c.bf16 %v666_v30, %v665_v29  ;;  %v672_v35 = vld [vmem:[%s1120_s1 + $0x68] sm:$0xff]  ;;  %v673_v39 = vld [vmem:[%s1120_s1 + $0x70] sm:$0xff]  ;;  %v674_v40 = vld [vmem:[%s1120_s1 + $0x78] sm:$0xff]  ;;  %v495_v9 = vshrl.u32 %v494_v6, 7  ;;  %p899_p1 = scmp.lt.s32.totalorder %s644_s22, %s644_s22 }
   0xa   :  { %v35_v20 = vld [vmem:[#allocation2] sm:$0xff]  ;;  %v36_v21 = vld [vmem:[#allocation2 + $0x8] sm:$0xff]  ;;  %831 = vmatprep.subr.bf16.mxu0 %v830_v14  ;;  %857 = vmatprep.subr.bf16.mxu1 %v919_v8  ;;  %v846_v38 = vpack.c.bf16 %v672_v35, %v671_v34  ;;  %v850_v43 = vpack.c.bf16 %v674_v40, %v673_v39  ;;  %v539_v49 = vld [vmem:[%s1123_s4 + $0x10] sm:$0xff] }
   0xb   :  { %739 = vmatprep.mubr.msk.f32.mxu0 %vm28_vm0, %v35_v20  ;;  %v144_v27 = vld [vmem:[#allocation2 + $0x1] sm:$0xff]  ;;  %v145_v31 = vld [vmem:[#allocation2 + $0x9] sm:$0xff]  ;;  %v540_v50 = vld [vmem:[%s1123_s4 + $0x18] sm:$0xff]  ;;  %v496_v10 = vadd.s32 8, %v495_v9 }
   0xc   :  { %v37_v23 = vld [vmem:[#allocation2 + $0x18] sm:$0xff]  ;;  %740 = vmatmul.mubr.msk.f32.vlgmr.msra.gmra.mrb[0].mxu0 %vm28_vm0, %v36_v21  ;;  %v38_v26 = vld [vmem:[#allocation2 + $0x20] sm:$0xff]  ;;  %v263_v41 = vld [vmem:[#allocation2 + $0xa] sm:$0xff]  ;;  %v858_v51 = vpack.c.bf16 %v540_v50, %v539_v49 }
   0xd   :  { %833 = vmatpush3.bf16.msra.mxu0 %v830_v14  ;;  %742 = vmatprep.mubr.msk.f32.mxu0 %vm28_vm0, %v37_v23  ;;  %v146_v32 = vld [vmem:[#allocation2 + $0x19] sm:$0xff]  ;;  %v147_v36 = vld [vmem:[#allocation2 + $0x21] sm:$0xff]  ;;  %v381_v46 = vld [vmem:[#allocation2 + $0xb] sm:$0xff] }
   0xe   :  { %835 = vmatprep.subr.bf16.mxu0 %v834_v22  ;;  %v262_v37 = vld [vmem:[#allocation2 + $0x2] sm:$0xff]  ;;  %v264_v42 = vld [vmem:[#allocation2 + $0x1a] sm:$0xff]  ;;  %859 = vmatpush3.bf16.msra.mxu1 %v858_v51  ;;  %v543_v55 = vld [vmem:[%s1123_s4 + $0x30] sm:$0xff] }
   0xf   :  { %v265_v44 = vld [vmem:[#allocation2 + $0x22] sm:$0xff]  ;;  %860 = vmatprep.subr.bf16.mxu1 %v919_v8  ;;  %v544_v56 = vld [vmem:[%s1123_s4 + $0x38] sm:$0xff]  ;;  %v547_v61 = vld [vmem:[%s1123_s4 + $0x50] sm:$0xff] }
  0x10   :  { %743 = vmatmul.mubr.msk.f32.gmra.mrb[2].mxu0 %vm28_vm0, %v38_v26  ;;  %v380_v45 = vld [vmem:[#allocation2 + $0x3] sm:$0xff]  ;;  %v382_v47 = vld [vmem:[#allocation2 + $0x1b] sm:$0xff]  ;;  %v864_v57 = vpack.c.bf16 %v544_v56, %v543_v55  ;;  %v551_v3 = vld [vmem:[%s1123_s4 + $0x70] sm:$0xff] }
  0x11   :  { %837 = vmatpush3.bf16.msra.mxu0 %v834_v22  ;;  %753 = vmatprep.mubr.msk.f32.mxu0 %vm28_vm0, %v144_v27  ;;  %v383_v48 = vld [vmem:[#allocation2 + $0x23] sm:$0xff]  ;;  %v548_v62 = vld [vmem:[%s1123_s4 + $0x58] sm:$0xff]  ;;  %v679_v11 = vld [vmem:[%s1122_s3] ss:$0 sm:$0xff] }
  0x12   :  { %839 = vmatprep.subr.bf16.mxu0 %v838_v28  ;;  %v541_v52 = vld [vmem:[%s1123_s4 + $0x20] sm:$0xff]  ;;  %v542_v53 = vld [vmem:[%s1123_s4 + $0x28] sm:$0xff]  ;;  %v870_v63 = vpack.c.bf16 %v548_v62, %v547_v61  ;;  %v552_v4 = vld [vmem:[%s1123_s4 + $0x78] sm:$0xff]  ;;  %vm503_vm2 = vcmp.lt.s32.totalorder %v496_v10, %v679_v11  ;;  %vm502_vm3 = vcmp.lt.s32.totalorder %v495_v9, %v679_v11 }
  0x13   :  { %v861_v54 = vpack.c.bf16 %v542_v53, %v541_v52  ;;  %v545_v58 = vld [vmem:[%s1123_s4 + $0x40] sm:$0xff]  ;;  %v546_v59 = vld [vmem:[%s1123_s4 + $0x48] sm:$0xff]  ;;  %v876_v5 = vpack.c.bf16 %v552_v4, %v551_v3 }
  0x14   :  { %754 = vmatmul.mubr.msk.f32.vlgmr.msra.gmra.mrb[0].mxu0 %vm28_vm0, %v145_v31  ;;  %v867_v60 = vpack.c.bf16 %v546_v59, %v545_v58  ;;  %v549_v0 = vld [vmem:[%s1123_s4 + $0x60] sm:$0xff]  ;;  %v550_v1 = vld [vmem:[%s1123_s4 + $0x68] sm:$0xff] }
  0x15   :  { %841 = vmatpush3.bf16.msra.mxu0 %v838_v28  ;;  %756 = vmatprep.mubr.msk.f32.mxu0 %vm28_vm0, %v146_v32  ;;  %v873_v2 = vpack.c.bf16 %v550_v1, %v549_v0  ;;  %v680_v31 = vld [vmem:[%s1121_s2] ss:$0 sm:$0xff]  ;;  %s894_s2 = scalar_lea.vmem %s644_s22, 32 }
  0x16   :  { %843 = vmatprep.subr.bf16.mxu0 %v842_v33  ;;  %862 = vmatpush3.bf16.msra.mxu1 %v861_v54  ;;  %v681_v39 = vld [vmem:[%s1124_s5] ss:$0 sm:$0xff]  ;;  %p895_p0 = scmp.ne.s32.totalorder %s644_s22, %s894_s2  ;;  %p900_p2 = scmp.lt.s32.totalorder %s894_s2, %s894_s2 }
  0x17   :  { %863 = vmatprep.subr.bf16.mxu1 %v919_v8 }
  0x18   :  { %757 = vmatmul.mubr.msk.f32.gmra.mrb[2].mxu0 %vm28_vm0, %v147_v36  ;;  %p901_p3 = por %p900_p2, %p899_p1 }
  0x19   :  { %845 = vmatpush3.bf16.msra.mxu0 %v842_v33  ;;  %767 = vmatprep.mubr.msk.f32.mxu0 %vm28_vm0, %v262_v37 }
  0x1a   :  { %847 = vmatprep.subr.bf16.mxu0 %v846_v38  ;;  %865 = vmatpush3.bf16.msra.mxu1 %v864_v57  ;;  %p902_p4 = pnand %p901_p3, %p895_p0 }
  0x1b   :  { %866 = vmatprep.subr.bf16.mxu1 %v919_v8 }
  0x1c   :  { %768 = vmatmul.mubr.msk.f32.vlgmr.msra.gmra.mrb[0].mxu0 %vm28_vm0, %v263_v41 }
  0x1d   :  { %849 = vmatpush3.bf16.msra.mxu0 %v846_v38  ;;  %770 = vmatprep.mubr.msk.f32.mxu0 %vm28_vm0, %v264_v42 }
  0x1e   :  { %851 = vmatprep.subr.bf16.mxu0 %v850_v43  ;;  %868 = vmatpush3.bf16.msra.mxu1 %v867_v60 }
  0x1f   :  { %869 = vmatprep.subr.bf16.mxu1 %v919_v8 }
  0x20   :  { %771 = vmatmul.mubr.msk.f32.gmra.mrb[2].mxu0 %vm28_vm0, %v265_v44 }
  0x21   :  { %853 = vmatpush3.bf16.msra.mxu0 %v850_v43  ;;  %781 = vmatprep.mubr.msk.f32.mxu0 %vm28_vm0, %v380_v45 }
  0x22   :  { %871 = vmatpush3.bf16.msra.mxu1 %v870_v63 }
  0x23   :  { %872 = vmatprep.subr.bf16.mxu1 %v919_v8 }
  0x24   :  { %782 = vmatmul.mubr.msk.f32.vlgmr.msra.gmra.mrb[0].mxu0 %vm28_vm0, %v381_v46 }
  0x25   :  { %784 = vmatprep.mubr.msk.f32.mxu0 %vm28_vm0, %v382_v47 }
  0x26   :  { %874 = vmatpush3.bf16.msra.mxu1 %v873_v2 }
  0x27   :  { %875 = vmatprep.subr.bf16.mxu1 %v919_v8 }
  0x28   :  { %785 = vmatmul.mubr.msk.f32.gmra.mrb[2].mxu0 %vm28_vm0, %v383_v48 }
  0x2a   :  { %877 = vmatpush3.bf16.msra.mxu1 %v876_v5 }
  0xf7   :  { %v783_v12 = vpop.f32.mrb[0].mxu0 }
  0xf8   :  { %v509_v13 = vsel %vm503_vm2, %v783_v12, -inf  ;;  %v467_v14 = vpop.f32.mrb[1].mxu0 }
  0xf9   :  { %v508_v15 = vsel %vm502_vm3, %v467_v14, -inf }
  0xfa   :  { %v512_v16 = vmax.f32 %v508_v15, %v509_v13 }
  0xfb   :  { %v786_v7 = vpop.f32.mrb[2].mxu0 }
  0xfc   :  { %v513_v17 = vrot.slane %v512_v16, 4  ;;  %v511_v18 = vsel %vm503_vm2, %v786_v7, -inf  ;;  %v477_v19 = vpop.f32.mrb[3].mxu0 }
  0xfd   :  { %v510_v8 = vsel %vm502_vm3, %v477_v19, -inf }
  0xfe   :  { %v514_v20 = vmax.f32 %v512_v16, %v513_v17  ;;  %v519_v21 = vmax.f32 %v510_v8, %v511_v18 }
 0x100   :  { %v515_v22 = vrot.slane %v514_v20, 2  ;;  %v520_v23 = vrot.slane %v519_v21, 4 }
 0x102   :  { %v516_v24 = vmax.f32 %v514_v20, %v515_v22  ;;  %v521_v25 = vmax.f32 %v519_v21, %v520_v23 }
 0x104   :  { %v517_v26 = vrot.slane %v516_v24, 1  ;;  %v522_v27 = vrot.slane %v521_v25, 2 }
 0x106   :  { %v523_v28 = vmax.f32 %v521_v25, %v522_v27  ;;  %v518_v29 = vmax.f32 %v516_v24, %v517_v26 }
 0x108   :  { %v524_v30 = vrot.slane %v523_v28, 1  ;;  %v533_v33 = vadd.f32 %v680_v31, %v518_v29 }
 0x10a   :  { %v525_v32 = vmax.f32 %v523_v28, %v524_v30  ;;  %v535_v36 = vmax.f32 %v533_v33, 0.0 }
 0x10c   :  { %v534_v34 = vadd.f32 %v680_v31, %v525_v32 }
 0x10e   :  { %v536_v35 = vmax.f32 %v534_v34, 0.0 }
 0x110   :  { %v562_v37 = vrot.slane %v536_v35, 7 }
 0x112   :  { %v564_v38 = vsel %vm563_vm4, %v562_v37, %v535_v36 }
 0x113   :  { %820 = vmatmul.mubr.f32.vlgmr.msra.gmra.mrb[0].mxu1 %v564_v38 }
 0x1e6   :  { %v632_v40 = vpop.f32.mrb[0].mxu1 }
 0x1e7   :  { %v633_v41 = vadd.f32 %v681_v39, %v632_v40  ;;  %v821_v42 = vpop.f32.mrb[1].mxu1 }
 0x1e9   :  { %636 = vst [vmem:[#allocation4] sm:$0x3] %v633_v41 }
 0x1ea   :  { %905 = shalt.err (!%p902_p4)
}
 0x1eb   :  { %s906_s0 = scalar_lea.hbm %s1125_s6, 32 }
 0x1ec   :  { %p907_p5 = scmp.ne.s32.totalorder %s1125_s6, %s906_s0  ;;  %p910_p6 = scmp.lt.u32.totalorder %s906_s0, %s1125_s6 }
 0x1ee   :  { %p912_p7 = pnand %p910_p6, %p907_p5 }
 0x1f0   :  { %915 = shalt.err (!%p912_p7)
}
 0x1f1   :  { %646 = dma.vmem_to_hbm [thread:$0]  %s644_s22, 32, %s1125_s6, [#allocation5]  }
 0x1f2   :  { %916 = dma.done.wait [#allocation5], 32  }
 0x1f3   :  { %917 = vsyncadd [#allocation5], 4294967264 }
 0x1f4   :  { %650 = vsyncpa [#allocation5], 1 }

</bundles_post_ra>
